<compile_context>
chip_gen: v7x
topology: tpu7x:2x2x1
jax: 0.10.0
libtpu: 0.0.40
codegen_flags: <defaults>
</compile_context>

<pallas_src>
import functools

import jax
import jax.numpy as jnp
from jax.experimental import pallas as pl
from jax.experimental.pallas import tpu as pltpu

EPS = 1e-9  # matches InsNorm default eps in DuRN_P_B


def _round_up(v, m):
    return (v + m - 1) // m * m


def _choose_row_tile(num_rows, hw_pad, itemsize):
    """Row tile over (n*c): multiple of sublane packing, ~2 MiB of f32 per block."""
    sub = 8 if itemsize >= 4 else 16          # f32 vs bf16 sublane packing
    target_bytes = 2 * 1024 * 1024            # per x block in f32 (v7x-safe)
    tr = max(sub, (target_bytes // (hw_pad * 4)) // sub * sub)
    rows_r = _round_up(num_rows, sub)
    tr = min(tr, rows_r)
    # Prefer >= 2 grid steps when there are enough rows: feeds both v7x
    # TensorCores and lets the pipeline overlap DMA with compute.
    if tr >= rows_r and rows_r >= 2 * sub:
        tr = _round_up(rows_r // 2, sub)
    return tr


def _instance_norm_kernel(x_ref, gb_ref, o_ref, *, inv_hw):
    # x_ref: (TR, HWp)   gb_ref: (TR, 2) = [gamma | beta]   o_ref: (TR, HWp)
    x = x_ref[...].astype(jnp.float32)
    s1 = jnp.sum(x, axis=-1, keepdims=True)            # (TR, 1)
    s2 = jnp.sum(x * x, axis=-1, keepdims=True)        # (TR, 1), same pass over x
    mean = s1 * inv_hw
    var = jnp.maximum(s2 * inv_hw - mean * mean, 0.0)  # clamp cancellation
    inv_std = jax.lax.rsqrt(var + EPS)
    gb = gb_ref[...].astype(jnp.float32)
    scale = inv_std * gb[:, 0:1]                       # (TR, 1)
    shift = gb[:, 1:2] - mean * scale                  # (TR, 1)
    # One FMA per element, no full-tile 'centered' temporary.
    o_ref[...] = (x * scale + shift).astype(o_ref.dtype)


@jax.jit
def feat_norm(x, gamma, beta):
    """Instance normalization over spatial dims of an NCHW tensor (affine)."""
    n, c, h, w = x.shape
    hw = h * w
    rows = n * c
    itemsize = jnp.dtype(x.dtype).itemsize

    hw_pad = _round_up(hw, 128)                        # lane-dense last dim
    tr = _choose_row_tile(rows, hw_pad, itemsize)
    num_tiles = pl.cdiv(rows, tr)
    rows_pad = num_tiles * tr

    x2 = x.reshape(rows, hw)
    if hw_pad != hw or rows_pad != rows:
        x2 = jnp.pad(x2, ((0, rows_pad - rows), (0, hw_pad - hw)))

    # Per-row (= per (sample, channel)) gamma/beta, fused into one array.
    gamma_rows = jnp.tile(gamma.astype(jnp.float32), n)
    beta_rows = jnp.tile(beta.astype(jnp.float32), n)
    if rows_pad != rows:
        gamma_rows = jnp.pad(gamma_rows, (0, rows_pad - rows))
        beta_rows = jnp.pad(beta_rows, (0, rows_pad - rows))
    gb = jnp.stack([gamma_rows, beta_rows], axis=-1)   # (rows_pad, 2)

    # Explicit VMEM budget: double-buffered in/out blocks + f32 temps + params.
    blk_io = tr * hw_pad * itemsize
    blk_f32 = tr * hw_pad * 4
    est = 4 * blk_io + 4 * blk_f32 + 4 * tr * 128 * 4 + (2 << 20)
    vmem_limit = int(min(max(est, 16 << 20), 48 << 20))   # leave headroom on v7x

    kernel = functools.partial(_instance_norm_kernel, inv_hw=1.0 / hw)
    out = pl.pallas_call(
        kernel,
        out_shape=jax.ShapeDtypeStruct((rows_pad, hw_pad), x.dtype),
        grid_spec=pltpu.PrefetchScalarGridSpec(
            num_scalar_prefetch=0,
            grid=(num_tiles,),
            in_specs=[
                pl.BlockSpec((tr, hw_pad), lambda i: (i, 0)),
                pl.BlockSpec((tr, 2), lambda i: (i, 0)),
            ],
            out_specs=pl.BlockSpec((tr, hw_pad), lambda i: (i, 0)),
        ),
        compiler_params=pltpu.CompilerParams(
            dimension_semantics=("parallel",),
            vmem_limit_bytes=vmem_limit,
        ),
    )(x2, gb)

    # TODO(synk): if a single 8-row block ever exceeds VMEM (huge H*W), add an
    # 'arbitrary' HW grid axis with a two-pass sum/normalize scheme.
    return out[:rows, :hw].reshape(n, c, h, w)


def _reference(x, gamma, beta):
    # Pure-JAX reference of InsNorm forward.
    n, c, h, w = x.shape
    xf = x.reshape(n, c, h * w).astype(jnp.float32)
    mean = jnp.mean(xf, axis=-1, keepdims=True)
    var = jnp.mean((xf - mean) ** 2, axis=-1, keepdims=True)
    out = (xf - mean) / jnp.sqrt(var + EPS)
    out = out * gamma.reshape(1, c, 1) + beta.reshape(1, c, 1)
    return out.reshape(n, c, h, w).astype(x.dtype)


if __name__ == "__main__":
    key = jax.random.PRNGKey(0)
    kx, kg = jax.random.split(key)

    N, C, H, W = 2, 4, 16, 16
    x = jax.random.normal(kx, (N, C, H, W), dtype=jnp.float32)

    # Deterministic parameter init mimicking InsNorm: scale ~ U(0,1), shift = 0.
    gamma = jax.random.uniform(kg, (C,), dtype=jnp.float32)
    beta = jnp.zeros((C,), dtype=jnp.float32)

    out = feat_norm(x, gamma, beta)
    out = jax.block_until_ready(out)

    ref = _reference(x, gamma, beta)
    assert out.shape == (N, C, H, W)
    assert jnp.allclose(out, ref, atol=1e-4, rtol=1e-4), "mismatch vs reference"

    print("KERNEL_OK")
</pallas_src>

<mosaic_0001>
module attributes {stable_mosaic.version = 11 : i64} {
  func.func @_instance_norm_kernel(%arg0: i32, %arg1: memref<8x256xf32, #tpu.memory_space<vmem>>, %arg2: memref<8x2xf32, #tpu.memory_space<vmem>>, %arg3: memref<8x256xf32, #tpu.memory_space<vmem>>) attributes {dimension_semantics = [#tpu.dimension_semantics<parallel>], iteration_bounds = array<i64: 1>, scalar_prefetch = 0 : i64, scratch_operands = 0 : i64, tpu.core_type = #tpu.core_type<tc>, window_params = [{transform_indices = @transform_0, window_bounds = array<i64: 8, 256>}, {transform_indices = @transform_1, window_bounds = array<i64: 8, 2>}, {transform_indices = @transform_2, window_bounds = array<i64: 8, 256>}]} {
    %c0 = arith.constant 0 : index
    %c0_0 = arith.constant 0 : index
    %0 = vector.load %arg1[%c0, %c0_0] : memref<8x256xf32, #tpu.memory_space<vmem>>, vector<8x256xf32>
    %cst = arith.constant dense<0.000000e+00> : vector<8xf32>
    %1 = vector.multi_reduction <add>, %0, %cst [1] : vector<8x256xf32> to vector<8xf32>
    %2 = vector.shape_cast %1 : vector<8xf32> to vector<8x1xf32>
    %3 = arith.mulf %0, %0 : vector<8x256xf32>
    %cst_1 = arith.constant dense<0.000000e+00> : vector<8xf32>
    %4 = vector.multi_reduction <add>, %3, %cst_1 [1] : vector<8x256xf32> to vector<8xf32>
    %5 = vector.shape_cast %4 : vector<8xf32> to vector<8x1xf32>
    %cst_2 = arith.constant 3.906250e-03 : f32
    %6 = vector.broadcast %cst_2 : f32 to vector<8x1xf32>
    %7 = arith.mulf %2, %6 : vector<8x1xf32>
    %cst_3 = arith.constant 3.906250e-03 : f32
    %8 = vector.broadcast %cst_3 : f32 to vector<8x1xf32>
    %9 = arith.mulf %5, %8 : vector<8x1xf32>
    %10 = arith.mulf %7, %7 : vector<8x1xf32>
    %11 = arith.subf %9, %10 : vector<8x1xf32>
    %cst_4 = arith.constant 0.000000e+00 : f32
    %12 = vector.broadcast %cst_4 : f32 to vector<8x1xf32>
    %13 = arith.maximumf %11, %12 : vector<8x1xf32>
    %cst_5 = arith.constant 9.99999971E-10 : f32
    %14 = vector.broadcast %cst_5 : f32 to vector<8x1xf32>
    %15 = arith.addf %13, %14 : vector<8x1xf32>
    %16 = math.rsqrt %15 : vector<8x1xf32>
    %c0_6 = arith.constant 0 : index
    %c0_7 = arith.constant 0 : index
    %17 = vector.load %arg2[%c0_6, %c0_7] : memref<8x2xf32, #tpu.memory_space<vmem>>, vector<8x2xf32>
    %18 = vector.extract_strided_slice %17 {offsets = [0, 0], sizes = [8, 1], strides = [1, 1]} : vector<8x2xf32> to vector<8x1xf32>
    %19 = arith.mulf %16, %18 : vector<8x1xf32>
    %20 = vector.extract_strided_slice %17 {offsets = [0, 1], sizes = [8, 1], strides = [1, 1]} : vector<8x2xf32> to vector<8x1xf32>
    %21 = arith.mulf %7, %19 : vector<8x1xf32>
    %22 = arith.subf %20, %21 : vector<8x1xf32>
    %23 = vector.broadcast %19 : vector<8x1xf32> to vector<8x256xf32>
    %24 = arith.mulf %0, %23 : vector<8x256xf32>
    %25 = vector.broadcast %22 : vector<8x1xf32> to vector<8x256xf32>
    %26 = arith.addf %24, %25 : vector<8x256xf32>
    %c0_8 = arith.constant 0 : index
    %c0_9 = arith.constant 0 : index
    %27 = vector.load %arg3[%c0_8, %c0_9] : memref<8x256xf32, #tpu.memory_space<vmem>>, vector<8x256xf32>
    tpu.vector_store %arg3[%c0_8, %c0_9], %26 {strides = array<i32>} : memref<8x256xf32, #tpu.memory_space<vmem>>, vector<8x256xf32>,
    return
  }
  func.func @transform_0(%arg0: i32) -> (i32, i32) {
    %c0_i32 = arith.constant 0 : i32
    %c0_i32_0 = arith.constant 0 : i32
    return %arg0, %c0_i32 : i32, i32
  }
  func.func @transform_1(%arg0: i32) -> (i32, i32) {
    %c0_i32 = arith.constant 0 : i32
    %c0_i32_0 = arith.constant 0 : i32
    return %arg0, %c0_i32 : i32, i32
  }
  func.func @transform_2(%arg0: i32) -> (i32, i32) {
    %c0_i32 = arith.constant 0 : i32
    %c0_i32_0 = arith.constant 0 : i32
    return %arg0, %c0_i32 : i32, i32
  }
}

</mosaic_0001>

<bundles_post_ra>
// kernel: tile.13
= control target key start
LH: loop header
LB: loop body
LE: loop exit
PB: predicated region body
PF: predicated region fallthrough
CT: control target
= control target key end

     0   :  { %s22_s0 = inlined_call_operand.vmem [shape: f32[4], index: 0, kind: input, shape index: {}]   ;;  %s23_s1 = inlined_call_operand.vmem [shape: f32[2,4], index: 1, kind: output, shape index: {}]  }
   0x1   :  { %v4_v0 = vld [vmem:[%s22_s0] ss:$0 sm:$0xff] }
   0x2   :  { %5 = vst [vmem:[%s23_s1] sm:$0x3] %v4_v0 }

// kernel: tile.18
= control target key start
LH: loop header
LB: loop body
LE: loop exit
PB: predicated region body
PF: predicated region fallthrough
CT: control target
= control target key end

     0   :  { %vm7_vm0 = vcmask 31744   ;;  %vm13_vm1 = vcmask 64544   ;;  %s39_s0 = inlined_call_operand.vmem [shape: f32[2,4], index: 0, kind: input, shape index: {}]   ;;  %s40_s1 = inlined_call_operand.vmem [shape: f32[8,1], index: 1, kind: output, shape index: {}]  }
   0x1   :  { %v4_v0 = vld [vmem:[%s39_s0] sm:$0x3]  ;;  %s22_s0 = smov 4  }
   0x2   :  { %5 = vst [vmem:[#allocation1] sm:$0x3] %v4_v0 }
   0x9   :  { %v10_v1 = vld [vmem:[#allocation1 + $0x1] sm:$0x1]   ;;  %v6_v2 = vld [vmem:[#allocation1] sm:$0x1]  }
   0xa   :  { %11 = vrot.lane.b32.xlu0 %v10_v1, %s22_s0  ;;  %8 = vst.msk [vmem:[#allocation0] sm:$0x1] %vm7_vm0, %v6_v2  }
  0x7c   :  { %v12_v3 = vpop.permute.xlu0 %11  }
  0x7d   :  { %14 = vst.msk [vmem:[#allocation0] sm:$0x1] %vm13_vm1, %v12_v3  }
  0x84   :  { %v18_v4 = vld [vmem:[#allocation0] sm:$0x1] }
  0x85   :  { %20 = vst [vmem:[%s40_s1] sm:$0x1] %v18_v4 }

// kernel: feat_norm.1
= control target key start
LH: loop header
LB: loop body
LE: loop exit
PB: predicated region body
PF: predicated region fallthrough
CT: control target
= control target key end

     0   :  { %v63_v6 = vmov 0   ;;  %v64_v15 = vmov 1   ;;  %s65_s14 = smov 1   ;;  %s96_s0 = inlined_call_operand.vmem [shape: f32[8,256], index: 0, kind: input, shape index: {}]   ;;  %s97_s1 = inlined_call_operand.vmem [shape: f32[8,2], index: 1, kind: input, shape index: {}]   ;;  %s98_s2 = inlined_call_operand.vmem [shape: f32[8,256], index: 2, kind: output, shape index: {}]  }
   0x1   :  { %v11_v0 = vld [vmem:[%s96_s0] sm:$0xff]  ;;  %v12_v1 = vld [vmem:[%s96_s0 + $0x8] sm:$0xff]  ;;  %59 = vset.pattern.permute.xlu1 %v63_v6  ;;  %60 = vset.pattern.permute.xlu0 %v64_v15 }
   0x2   :  { %v13_v2 = vadd.f32 %v12_v1, %v11_v0  ;;  %v16_v3 = vmul.f32 %v11_v0, %v11_v0  ;;  %v17_v4 = vmul.f32 %v12_v1, %v12_v1  ;;  %v28_v16 = vld [vmem:[%s97_s1] sm:$0xff] }
   0x4   :  { %14 = vadd.xlane.f32.xlu0 %v13_v2  ;;  %v18_v5 = vadd.f32 %v17_v4, %v16_v3 }
   0x8   :  { %19 = vadd.xlane.f32.xlu0 %v18_v5 }
  0x91   :  { %v15_v7 = vpop.xlane.xlu0 %14 }
  0x92   :  { %v21_v8 = vmul.f32 0.00390625, %v15_v7 }
  0x94   :  { %v23_v10 = vmul.f32 %v21_v8, %v21_v8 }
  0x95   :  { %v20_v9 = vpop.xlane.xlu0 %19 }
  0x96   :  { %v22_v11 = vmul.f32 0.00390625, %v20_v9 }
  0x98   :  { %v24_v12 = vsub.f32 %v22_v11, %v23_v10 }
  0x9a   :  { %v25_v13 = vmax.f32 %v24_v12, 0.0 }
  0x9c   :  { %v26_v14 = vadd.f32 1e-09, %v25_v13 }
  0x9e   :  { %61 = vrsqrt.f32 %v26_v14 }
  0xa8   :  { %v62_v17 = vpop.eup %61 }
  0xa9   :  { %v29_v18 = vmul.f32 %v62_v17, %v28_v16 }
  0xab   :  { %v30_v19 = vmul.f32 %v29_v18, %v21_v8 }
  0xad   :  { %32 = vrot.lane.b32.xlu1 %v30_v19, %s65_s14 }
  0xb1   :  { %38 = vperm.xlu1 %59, %v29_v18  }
 0x11f   :  { %v33_v20 = vpop.permute.xlu1 %32 }
 0x120   :  { %v35_v21 = vsub.f32 %v28_v16, %v33_v20 }
 0x122   :  { %45 = vperm.xlu0 %60, %v35_v21  }
 0x130   :  { %v39_v22 = vpop.permute.xlu1 %38 }
 0x131   :  { %v41_v23 = vmul.f32 %v39_v22, %v11_v0  ;;  %v42_v24 = vmul.f32 %v39_v22, %v12_v1 }
 0x1a1   :  { %v46_v25 = vpop.permute.xlu0 %45 }
 0x1a2   :  { %v48_v26 = vadd.f32 %v46_v25, %v41_v23  ;;  %v49_v27 = vadd.f32 %v46_v25, %v42_v24 }
 0x1a4   :  { %50 = vst [vmem:[%s98_s2] sm:$0xff] %v48_v26  ;;  %51 = vst [vmem:[%s98_s2 + $0x8] sm:$0xff] %v49_v27 }

</bundles_post_ra>
